<compile_context>
chip_gen: v6e
topology: v6e:2x2x1
jax: 0.10.0
libtpu: 0.0.40
codegen_flags: <defaults>
</compile_context>

<pallas_src>
import functools

import jax
import jax.numpy as jnp
from jax.experimental import pallas as pl
from jax.experimental.pallas import tpu as pltpu


def _round_up(x: int, m: int) -> int:
    return (x + m - 1) // m * m


def _ntxent_koleo_kernel(scalar_ref,          # SMEM: [3] int32 = (rank, N_real, M_real)
                         emb_ref,             # [TR, Dp]  input dtype
                         all_emb_ref,         # [TM, Dp]  input dtype
                         lab_ref,             # [TR, 1]   int32
                         all_lab_ref,         # [1, TM]   int32
                         ntxent_ref,          # [1, 1] f32 out: sum of masked -log(prob)
                         koleo_ref,           # [1, 1] f32 out: sum of 0.5*log(2-2*max_nm)
                         nm_sum_ref,          # VMEM [TR, 1] f32 scratch
                         row_max_ref,         # VMEM [TR, 1] f32 scratch
                         *,
                         temperature: float):
    TR = emb_ref.shape[0]
    TM = all_emb_ref.shape[0]

    ri = pl.program_id(0)          # row tile
    p = pl.program_id(1)           # pass: 0 = stats, 1 = ntxent
    mt = pl.program_id(2)          # M tile (reduction axis, innermost)
    num_mt = pl.num_programs(2)

    rank = scalar_ref[0]
    n_real = scalar_ref[1]
    m_real = scalar_ref[2]

    row0 = ri * TR
    col0 = mt * TM

    # ---- init global output accumulators at the very first grid point ----
    @pl.when(jnp.logical_and(jnp.logical_and(ri == 0, p == 0), mt == 0))
    def _():
        ntxent_ref[...] = jnp.zeros_like(ntxent_ref)
        koleo_ref[...] = jnp.zeros_like(koleo_ref)

    # ---- init per-row-tile scratch at the start of pass 0 ----
    @pl.when(jnp.logical_and(p == 0, mt == 0))
    def _():
        nm_sum_ref[...] = jnp.zeros_like(nm_sum_ref)
        row_max_ref[...] = jnp.full_like(row_max_ref, -100.0)

    # ---- shared per-tile math (both passes) ----
    # Transposed-RHS contraction: no explicit [D, M] transpose through the XLU.
    sim = jax.lax.dot_general(
        emb_ref[...], all_emb_ref[...],
        dimension_numbers=(((1,), (1,)), ((), ())),
        preferred_element_type=jnp.float32)                     # [TR, TM] f32

    scaled = sim * jnp.float32(1.0 / temperature)
    logits = jnp.exp(scaled)                                    # [TR, TM]
    matches = lab_ref[...] == all_lab_ref[...]                  # [TR, TM] bool

    col_ids = col0 + jax.lax.broadcasted_iota(jnp.int32, (1, TM), 1)
    col_valid = col_ids < m_real                                # [1, TM]
    row_ids = row0 + jax.lax.broadcasted_iota(jnp.int32, (TR, 1), 0)
    row_valid = row_ids < n_real                                # [TR, 1]

    # ---- pass 0: accumulate non-match exp-sum and non-match row max ----
    @pl.when(p == 0)
    def _():
        nm_mask = jnp.logical_and(jnp.logical_not(matches), col_valid)
        nm_sum_ref[...] += jnp.sum(jnp.where(nm_mask, logits, 0.0),
                                   axis=1, keepdims=True)
        masked_sim = jnp.where(nm_mask, sim, jnp.float32(-100.0))
        row_max_ref[...] = jnp.maximum(
            row_max_ref[...], jnp.max(masked_sim, axis=1, keepdims=True))

    # ---- pass 0 finalize (last M tile): fold row max into the KoLeo sum ----
    @pl.when(jnp.logical_and(p == 0, mt == num_mt - 1))
    def _():
        closest_sq = jnp.maximum(2.0 - 2.0 * row_max_ref[...], 1e-6)  # [TR,1]
        log_closest = 0.5 * jnp.log(closest_sq)      # sqrt folded into the log
        contrib = jnp.where(row_valid, log_closest, 0.0)
        koleo_ref[...] += jnp.sum(contrib, axis=0, keepdims=True)

    # ---- pass 1: NT-Xent numerator; identity mask only where it can hit ----
    rank_start = rank * n_real

    def _accumulate_ntxent(remove_identity):
        partitions = logits + (nm_sum_ref[...] + 1e-6)          # [TR, TM]
        # -log(logits / partitions) = log(partitions) - scaled
        neg_log_prob = jnp.log(partitions) - scaled
        mask = jnp.logical_and(jnp.logical_and(matches, col_valid), row_valid)
        if remove_identity:
            row_idx = row0 + jax.lax.broadcasted_iota(jnp.int32, (TR, TM), 0)
            col_idx = col0 + jax.lax.broadcasted_iota(jnp.int32, (TR, TM), 1)
            mask = jnp.logical_and(mask, col_idx != rank_start + row_idx)
        per_row = jnp.sum(jnp.where(mask, neg_log_prob, 0.0),
                          axis=1, keepdims=True)                # [TR, 1]
        ntxent_ref[...] += jnp.sum(per_row, axis=0, keepdims=True)

    tile_overlaps_rank = jnp.logical_and(col0 < rank_start + n_real,
                                         col0 + TM > rank_start)

    @pl.when(jnp.logical_and(p == 1, tile_overlaps_rank))
    def _():
        _accumulate_ntxent(True)

    @pl.when(jnp.logical_and(p == 1, jnp.logical_not(tile_overlaps_rank)))
    def _():
        _accumulate_ntxent(False)


def ntxent_koleo_loss(embeddings, labels, all_embeddings, all_labels, rank,
                      temperature: float = 0.5, entropy_weight: float = 10.0):
    """Pallas TPU implementation of NTXentKoLeoLoss.forward."""
    N, D = embeddings.shape
    M, D2 = all_embeddings.shape
    assert D == D2

    # --- pad to MXU / vreg-aligned shapes and pick tiles ---
    d_pad = _round_up(D, 128)
    tm = min(512, _round_up(M, 128))        # streamed M tile ('arbitrary' axis)
    m_pad = _round_up(M, tm)
    tr = min(256, _round_up(N, 8))          # row tile (resident per pass)
    n_pad = _round_up(N, tr)

    dt = embeddings.dtype                   # keep bf16 inputs in bf16 (no f32 upcast)
    emb = jnp.zeros((n_pad, d_pad), dtype=dt).at[:N, :D].set(embeddings)
    all_emb = jnp.zeros((m_pad, d_pad), dtype=dt).at[:M, :D].set(
        all_embeddings.astype(dt))
    lab = jnp.full((n_pad, 1), -1, dtype=jnp.int32).at[:N, 0].set(
        labels.astype(jnp.int32).reshape(N))
    all_lab = jnp.full((1, m_pad), -2, dtype=jnp.int32).at[0, :M].set(
        all_labels.astype(jnp.int32).reshape(M))
    scalars = jnp.asarray([rank, N, M], dtype=jnp.int32)

    kernel = functools.partial(_ntxent_koleo_kernel, temperature=temperature)

    grid = (n_pad // tr, 2, m_pad // tm)    # (row tiles, pass, M tiles)

    ntxent_sum, koleo_sum = pl.pallas_call(
        kernel,
        out_shape=(jax.ShapeDtypeStruct((1, 1), jnp.float32),
                   jax.ShapeDtypeStruct((1, 1), jnp.float32)),
        grid_spec=pltpu.PrefetchScalarGridSpec(
            num_scalar_prefetch=1,
            grid=grid,
            in_specs=[
                pl.BlockSpec((tr, d_pad), lambda ri, p, mt, s: (ri, 0)),
                pl.BlockSpec((tm, d_pad), lambda ri, p, mt, s: (mt, 0)),
                pl.BlockSpec((tr, 1), lambda ri, p, mt, s: (ri, 0)),
                pl.BlockSpec((1, tm), lambda ri, p, mt, s: (0, mt)),
            ],
            out_specs=[
                pl.BlockSpec((1, 1), lambda ri, p, mt, s: (0, 0)),
                pl.BlockSpec((1, 1), lambda ri, p, mt, s: (0, 0)),
            ],
            scratch_shapes=[
                pltpu.VMEM((tr, 1), jnp.float32),   # non-match exp-sum per row
                pltpu.VMEM((tr, 1), jnp.float32),   # non-match row max (KoLeo)
            ],
        ),
        # Scalar outputs accumulate across every grid axis, so all axes must
        # stay 'arbitrary' (a 'parallel' row axis would race on megacore).
        # TODO(synk): emit per-row-tile partial sums so axis 0 can be marked
        # 'parallel' and shard across v7x's two TensorCores.
        compiler_params=pltpu.CompilerParams(
            dimension_semantics=("arbitrary", "arbitrary", "arbitrary")),
    )(scalars, emb, all_emb, lab, all_lab)

    ntxent = ntxent_sum[0, 0] / jnp.float32(N)
    koleo = -koleo_sum[0, 0] / jnp.float32(N)
    loss = ntxent + koleo * jnp.float32(entropy_weight)
    return loss, {"ntxent": ntxent, "koleo": koleo}


def _reference(embeddings, labels, all_embeddings, all_labels, rank,
               temperature=0.5, entropy_weight=10.0):
    """Pure-JAX reference mirroring the PyTorch module (for sanity check)."""
    N = embeddings.shape[0]
    sim = embeddings @ all_embeddings.T
    matches = labels[:, None] == all_labels[None, :]
    non_matches = ~matches
    identity = jnp.zeros_like(sim).at[:, rank * N:(rank + 1) * N].set(jnp.eye(N))
    nontrivial = matches & ~identity.astype(bool)
    logits = jnp.exp(sim / temperature)
    partitions = logits + ((non_matches * logits).sum(axis=1) + 1e-6)[:, None]
    probabilities = logits / partitions
    ntxent = (-jnp.log(probabilities) * nontrivial).sum() / sim.shape[0]
    max_nm = jnp.max(jnp.where(non_matches, sim, -100.0), axis=1, keepdims=True)
    closest = jnp.sqrt(jnp.maximum(2.0 - 2.0 * max_nm, 1e-6))
    koleo = -jnp.log(closest).mean()
    return ntxent + koleo * entropy_weight, ntxent, koleo


if __name__ == "__main__":
    key = jax.random.PRNGKey(0)
    N, D, world_size = 8, 32, 2
    M = world_size * N
    rank = 1

    k1, k2, k3, k4 = jax.random.split(key, 4)
    # unit-norm embeddings (typical for cosine-similarity contrastive losses)
    emb = jax.random.normal(k1, (N, D), dtype=jnp.float32)
    emb = emb / jnp.linalg.norm(emb, axis=1, keepdims=True)
    all_emb = jax.random.normal(k2, (M, D), dtype=jnp.float32)
    all_emb = all_emb / jnp.linalg.norm(all_emb, axis=1, keepdims=True)
    # place this rank's shard into the gathered tensors (realistic setup)
    all_emb = all_emb.at[rank * N:(rank + 1) * N].set(emb)

    labels = jax.random.randint(k3, (N,), 0, 4, dtype=jnp.int32)
    all_labels = jax.random.randint(k4, (M,), 0, 4, dtype=jnp.int32)
    all_labels = all_labels.at[rank * N:(rank + 1) * N].set(labels)

    loss, stats = ntxent_koleo_loss(emb, labels, all_emb, all_labels, rank)
    loss = jax.block_until_ready(loss)

    ref_loss, ref_ntxent, ref_koleo = _reference(emb, labels, all_emb,
                                                 all_labels, rank)
    assert jnp.allclose(loss, ref_loss, rtol=1e-5, atol=1e-5), (loss, ref_loss)
    assert jnp.allclose(stats["ntxent"], ref_ntxent, rtol=1e-5, atol=1e-5)
    assert jnp.allclose(stats["koleo"], ref_koleo, rtol=1e-5, atol=1e-5)

    print("KERNEL_OK")
</pallas_src>

<mosaic_0001>
module attributes {stable_mosaic.version = 11 : i64} {
  func.func @_ntxent_koleo_kernel(%arg0: i32, %arg1: i32, %arg2: i32, %arg3: memref<3xi32, #tpu.memory_space<smem>>, %arg4: memref<8x128xf32, #tpu.memory_space<vmem>>, %arg5: memref<128x128xf32, #tpu.memory_space<vmem>>, %arg6: memref<8x1xi32, #tpu.memory_space<vmem>>, %arg7: memref<1x128xi32, #tpu.memory_space<vmem>>, %arg8: memref<1x1xf32, #tpu.memory_space<vmem>>, %arg9: memref<1x1xf32, #tpu.memory_space<vmem>>, %arg10: memref<8x1xf32, #tpu.memory_space<vmem>>, %arg11: memref<8x1xf32, #tpu.memory_space<vmem>>) attributes {dimension_semantics = [#tpu.dimension_semantics<arbitrary>, #tpu.dimension_semantics<arbitrary>, #tpu.dimension_semantics<arbitrary>], iteration_bounds = array<i64: 1, 2, 1>, scalar_prefetch = 1 : i64, scratch_operands = 2 : i64, tpu.core_type = #tpu.core_type<tc>, window_params = [{transform_indices = @transform_0, window_bounds = array<i64: 8, 128>}, {transform_indices = @transform_1, window_bounds = array<i64: 128, 128>}, {transform_indices = @transform_2, window_bounds = array<i64: 8, 1>}, {transform_indices = @transform_3, window_bounds = array<i64: 1, 128>}, {pipeline_mode = #tpu.pipeline_mode<synchronous>, transform_indices = @transform_4, window_bounds = array<i64: 1, 1>}, {pipeline_mode = #tpu.pipeline_mode<synchronous>, transform_indices = @transform_5, window_bounds = array<i64: 1, 1>}]} {
    %c0 = arith.constant 0 : index
    %0 = memref.load %arg3[%c0] : memref<3xi32, #tpu.memory_space<smem>>
    %c1 = arith.constant 1 : index
    %1 = memref.load %arg3[%c1] : memref<3xi32, #tpu.memory_space<smem>>
    %c2 = arith.constant 2 : index
    %2 = memref.load %arg3[%c2] : memref<3xi32, #tpu.memory_space<smem>>
    %c8_i32 = arith.constant 8 : i32
    %3 = arith.muli %arg0, %c8_i32 : i32
    %c128_i32 = arith.constant 128 : i32
    %4 = arith.muli %arg2, %c128_i32 : i32
    %c0_i32 = arith.constant 0 : i32
    %5 = arith.cmpi eq, %arg0, %c0_i32 : i32
    %c0_i32_0 = arith.constant 0 : i32
    %6 = arith.cmpi eq, %arg1, %c0_i32_0 : i32
    %7 = arith.andi %5, %6 : i1
    %c0_i32_1 = arith.constant 0 : i32
    %8 = arith.cmpi eq, %arg2, %c0_i32_1 : i32
    %9 = arith.andi %7, %8 : i1
    %10 = arith.extui %9 : i1 to i32
    %c0_i32_2 = arith.constant 0 : i32
    %11 = arith.cmpi ne, %10, %c0_i32_2 : i32
    scf.if %11 {
      %cst_24 = arith.constant 0.000000e+00 : f32
      %61 = vector.broadcast %cst_24 : f32 to vector<1x1xf32>
      %c0_25 = arith.constant 0 : index
      %c0_26 = arith.constant 0 : index
      %62 = vector.load %arg8[%c0_25, %c0_26] : memref<1x1xf32, #tpu.memory_space<vmem>>, vector<1x1xf32>
      tpu.vector_store %arg8[%c0_25, %c0_26], %61 {strides = array<i32>} : memref<1x1xf32, #tpu.memory_space<vmem>>, vector<1x1xf32>,
      %cst_27 = arith.constant 0.000000e+00 : f32
      %63 = vector.broadcast %cst_27 : f32 to vector<1x1xf32>
      %c0_28 = arith.constant 0 : index
      %c0_29 = arith.constant 0 : index
      %64 = vector.load %arg9[%c0_28, %c0_29] : memref<1x1xf32, #tpu.memory_space<vmem>>, vector<1x1xf32>
      tpu.vector_store %arg9[%c0_28, %c0_29], %63 {strides = array<i32>} : memref<1x1xf32, #tpu.memory_space<vmem>>, vector<1x1xf32>,
    } else {
    }
    %c0_i32_3 = arith.constant 0 : i32
    %12 = arith.cmpi eq, %arg1, %c0_i32_3 : i32
    %c0_i32_4 = arith.constant 0 : i32
    %13 = arith.cmpi eq, %arg2, %c0_i32_4 : i32
    %14 = arith.andi %12, %13 : i1
    %15 = arith.extui %14 : i1 to i32
    %c0_i32_5 = arith.constant 0 : i32
    %16 = arith.cmpi ne, %15, %c0_i32_5 : i32
    scf.if %16 {
      %cst_24 = arith.constant 0.000000e+00 : f32
      %61 = vector.broadcast %cst_24 : f32 to vector<8x1xf32>
      %c0_25 = arith.constant 0 : index
      %c0_26 = arith.constant 0 : index
      %62 = vector.load %arg10[%c0_25, %c0_26] : memref<8x1xf32, #tpu.memory_space<vmem>>, vector<8x1xf32>
      tpu.vector_store %arg10[%c0_25, %c0_26], %61 {strides = array<i32>} : memref<8x1xf32, #tpu.memory_space<vmem>>, vector<8x1xf32>,
      %cst_27 = arith.constant -1.000000e+02 : f32
      %63 = vector.broadcast %cst_27 : f32 to vector<8x1xf32>
      %c0_28 = arith.constant 0 : index
      %c0_29 = arith.constant 0 : index
      %64 = vector.load %arg11[%c0_28, %c0_29] : memref<8x1xf32, #tpu.memory_space<vmem>>, vector<8x1xf32>
      tpu.vector_store %arg11[%c0_28, %c0_29], %63 {strides = array<i32>} : memref<8x1xf32, #tpu.memory_space<vmem>>, vector<8x1xf32>,
    } else {
    }
    %c0_6 = arith.constant 0 : index
    %c0_7 = arith.constant 0 : index
    %17 = vector.load %arg4[%c0_6, %c0_7] : memref<8x128xf32, #tpu.memory_space<vmem>>, vector<8x128xf32>
    %c0_8 = arith.constant 0 : index
    %c0_9 = arith.constant 0 : index
    %18 = vector.load %arg5[%c0_8, %c0_9] : memref<128x128xf32, #tpu.memory_space<vmem>>, vector<128x128xf32>
    %cst = arith.constant dense<0.000000e+00> : vector<8x128xf32>
    %19 = tpu.matmul %17, %18, %cst {dimension_numbers = #tpu.dot_dimension_numbers<[1], [1], [0], [0], [0, 0, 1, 0], [], []>} : vector<8x128xf32>, vector<128x128xf32>, vector<8x128xf32> -> vector<8x128xf32>
    %cst_10 = arith.constant 2.000000e+00 : f32
    %20 = vector.broadcast %cst_10 : f32 to vector<8x128xf32>
    %21 = arith.mulf %19, %20 : vector<8x128xf32>
    %22 = math.exp %21 : vector<8x128xf32>
    %c0_11 = arith.constant 0 : index
    %c0_12 = arith.constant 0 : index
    %23 = vector.load %arg6[%c0_11, %c0_12] : memref<8x1xi32, #tpu.memory_space<vmem>>, vector<8x1xi32>
    %c0_13 = arith.constant 0 : index
    %c0_14 = arith.constant 0 : index
    %24 = vector.load %arg7[%c0_13, %c0_14] : memref<1x128xi32, #tpu.memory_space<vmem>>, vector<1x128xi32>
    %25 = vector.broadcast %23 : vector<8x1xi32> to vector<8x128xi32>
    %26 = vector.broadcast %24 : vector<1x128xi32> to vector<8x128xi32>
    %27 = arith.cmpi eq, %25, %26 : vector<8x128xi32>
    %28 = tpu.iota {dimensions = array<i32: 1>} : vector<1x128xi32>
    %29 = vector.broadcast %4 : i32 to vector<1x128xi32>
    %30 = arith.addi %29, %28 : vector<1x128xi32>
    %31 = vector.broadcast %2 : i32 to vector<1x128xi32>
    %32 = arith.cmpi slt, %30, %31 : vector<1x128xi32>
    %33 = tpu.iota {dimensions = array<i32: 0>} : vector<8x1xi32>
    %34 = vector.broadcast %3 : i32 to vector<8x1xi32>
    %35 = arith.addi %34, %33 : vector<8x1xi32>
    %36 = vector.broadcast %1 : i32 to vector<8x1xi32>
    %37 = arith.cmpi slt, %35, %36 : vector<8x1xi32>
    %c0_i32_15 = arith.constant 0 : i32
    %38 = arith.cmpi eq, %arg1, %c0_i32_15 : i32
    %39 = arith.extui %38 : i1 to i32
    %c0_i32_16 = arith.constant 0 : i32
    %40 = arith.cmpi ne, %39, %c0_i32_16 : i32
    scf.if %40 {
      %cst_24 = arith.constant dense<true> : vector<8x128xi1>
      %61 = arith.xori %27, %cst_24 : vector<8x128xi1>
      %62 = vector.broadcast %32 : vector<1x128xi1> to vector<8x128xi1>
      %63 = arith.andi %61, %62 : vector<8x128xi1>
      %c0_25 = arith.constant 0 : index
      %c0_26 = arith.constant 0 : index
      %64 = vector.load %arg10[%c0_25, %c0_26] : memref<8x1xf32, #tpu.memory_space<vmem>>, vector<8x1xf32>
      %cst_27 = arith.constant 0.000000e+00 : f32
      %65 = vector.broadcast %cst_27 : f32 to vector<8x128xf32>
      %66 = arith.select %63, %22, %65 : vector<8x128xi1>, vector<8x128xf32>
      %cst_28 = arith.constant dense<0.000000e+00> : vector<8xf32>
      %67 = vector.multi_reduction <add>, %66, %cst_28 [1] : vector<8x128xf32> to vector<8xf32>
      %68 = vector.shape_cast %67 : vector<8xf32> to vector<8x1xf32>
      %69 = arith.addf %64, %68 : vector<8x1xf32>
      %c0_29 = arith.constant 0 : index
      %c0_30 = arith.constant 0 : index
      %70 = vector.load %arg10[%c0_29, %c0_30] : memref<8x1xf32, #tpu.memory_space<vmem>>, vector<8x1xf32>
      tpu.vector_store %arg10[%c0_29, %c0_30], %69 {strides = array<i32>} : memref<8x1xf32, #tpu.memory_space<vmem>>, vector<8x1xf32>,
      %cst_31 = arith.constant -1.000000e+02 : f32
      %71 = vector.broadcast %cst_31 : f32 to vector<8x128xf32>
      %72 = arith.select %63, %19, %71 : vector<8x128xi1>, vector<8x128xf32>
      %c0_32 = arith.constant 0 : index
      %c0_33 = arith.constant 0 : index
      %73 = vector.load %arg11[%c0_32, %c0_33] : memref<8x1xf32, #tpu.memory_space<vmem>>, vector<8x1xf32>
      %cst_34 = arith.constant dense<0xFF800000> : vector<8xf32>
      %74 = vector.multi_reduction <maximumf>, %72, %cst_34 [1] : vector<8x128xf32> to vector<8xf32>
      %75 = vector.shape_cast %74 : vector<8xf32> to vector<8x1xf32>
      %76 = arith.maximumf %73, %75 : vector<8x1xf32>
      %c0_35 = arith.constant 0 : index
      %c0_36 = arith.constant 0 : index
      %77 = vector.load %arg11[%c0_35, %c0_36] : memref<8x1xf32, #tpu.memory_space<vmem>>, vector<8x1xf32>
      tpu.vector_store %arg11[%c0_35, %c0_36], %76 {strides = array<i32>} : memref<8x1xf32, #tpu.memory_space<vmem>>, vector<8x1xf32>,
    } else {
    }
    %c0_i32_17 = arith.constant 0 : i32
    %41 = arith.cmpi eq, %arg1, %c0_i32_17 : i32
    %c0_i32_18 = arith.constant 0 : i32
    %42 = arith.cmpi eq, %arg2, %c0_i32_18 : i32
    %43 = arith.andi %41, %42 : i1
    %44 = arith.extui %43 : i1 to i32
    %c0_i32_19 = arith.constant 0 : i32
    %45 = arith.cmpi ne, %44, %c0_i32_19 : i32
    scf.if %45 {
      %c0_24 = arith.constant 0 : index
      %c0_25 = arith.constant 0 : index
      %61 = vector.load %arg11[%c0_24, %c0_25] : memref<8x1xf32, #tpu.memory_space<vmem>>, vector<8x1xf32>
      %cst_26 = arith.constant 2.000000e+00 : f32
      %62 = vector.broadcast %cst_26 : f32 to vector<8x1xf32>
      %63 = arith.mulf %62, %61 : vector<8x1xf32>
      %cst_27 = arith.constant 2.000000e+00 : f32
      %64 = vector.broadcast %cst_27 : f32 to vector<8x1xf32>
      %65 = arith.subf %64, %63 : vector<8x1xf32>
      %cst_28 = arith.constant 9.99999997E-7 : f32
      %66 = vector.broadcast %cst_28 : f32 to vector<8x1xf32>
      %67 = arith.maximumf %65, %66 : vector<8x1xf32>
      %68 = math.log %67 : vector<8x1xf32>
      %cst_29 = arith.constant 5.000000e-01 : f32
      %69 = vector.broadcast %cst_29 : f32 to vector<8x1xf32>
      %70 = arith.mulf %69, %68 : vector<8x1xf32>
      %cst_30 = arith.constant 0.000000e+00 : f32
      %71 = vector.broadcast %cst_30 : f32 to vector<8x1xf32>
      %72 = arith.select %37, %70, %71 : vector<8x1xi1>, vector<8x1xf32>
      %c0_31 = arith.constant 0 : index
      %c0_32 = arith.constant 0 : index
      %73 = vector.load %arg9[%c0_31, %c0_32] : memref<1x1xf32, #tpu.memory_space<vmem>>, vector<1x1xf32>
      %cst_33 = arith.constant dense<0.000000e+00> : vector<1xf32>
      %74 = vector.multi_reduction <add>, %72, %cst_33 [0] : vector<8x1xf32> to vector<1xf32>
      %75 = vector.shape_cast %74 : vector<1xf32> to vector<1x1xf32>
      %76 = arith.addf %73, %75 : vector<1x1xf32>
      %c0_34 = arith.constant 0 : index
      %c0_35 = arith.constant 0 : index
      %77 = vector.load %arg9[%c0_34, %c0_35] : memref<1x1xf32, #tpu.memory_space<vmem>>, vector<1x1xf32>
      tpu.vector_store %arg9[%c0_34, %c0_35], %76 {strides = array<i32>} : memref<1x1xf32, #tpu.memory_space<vmem>>, vector<1x1xf32>,
    } else {
    }
    %46 = arith.muli %0, %1 : i32
    %47 = arith.addi %46, %1 : i32
    %48 = arith.cmpi slt, %4, %47 : i32
    %c128_i32_20 = arith.constant 128 : i32
    %49 = arith.addi %4, %c128_i32_20 : i32
    %50 = arith.cmpi sgt, %49, %46 : i32
    %51 = arith.andi %48, %50 : i1
    %c1_i32 = arith.constant 1 : i32
    %52 = arith.cmpi eq, %arg1, %c1_i32 : i32
    %53 = arith.andi %52, %51 : i1
    %54 = arith.extui %53 : i1 to i32
    %c0_i32_21 = arith.constant 0 : i32
    %55 = arith.cmpi ne, %54, %c0_i32_21 : i32
    scf.if %55 {
      %c0_24 = arith.constant 0 : index
      %c0_25 = arith.constant 0 : index
      %61 = vector.load %arg10[%c0_24, %c0_25] : memref<8x1xf32, #tpu.memory_space<vmem>>, vector<8x1xf32>
      %cst_26 = arith.constant 9.99999997E-7 : f32
      %62 = vector.broadcast %cst_26 : f32 to vector<8x1xf32>
      %63 = arith.addf %61, %62 : vector<8x1xf32>
      %64 = vector.broadcast %63 : vector<8x1xf32> to vector<8x128xf32>
      %65 = arith.addf %22, %64 : vector<8x128xf32>
      %66 = math.log %65 : vector<8x128xf32>
      %67 = arith.subf %66, %21 : vector<8x128xf32>
      %68 = vector.broadcast %32 : vector<1x128xi1> to vector<8x128xi1>
      %69 = arith.andi %27, %68 : vector<8x128xi1>
      %70 = vector.broadcast %37 : vector<8x1xi1> to vector<8x128xi1>
      %71 = arith.andi %69, %70 : vector<8x128xi1>
      %72 = tpu.iota {dimensions = array<i32: 0>} : vector<8x128xi32>
      %73 = vector.broadcast %3 : i32 to vector<8x128xi32>
      %74 = arith.addi %73, %72 : vector<8x128xi32>
      %75 = tpu.iota {dimensions = array<i32: 1>} : vector<8x128xi32>
      %76 = vector.broadcast %4 : i32 to vector<8x128xi32>
      %77 = arith.addi %76, %75 : vector<8x128xi32>
      %78 = vector.broadcast %46 : i32 to vector<8x128xi32>
      %79 = arith.addi %78, %74 : vector<8x128xi32>
      %80 = arith.cmpi ne, %77, %79 : vector<8x128xi32>
      %81 = arith.andi %71, %80 : vector<8x128xi1>
      %cst_27 = arith.constant 0.000000e+00 : f32
      %82 = vector.broadcast %cst_27 : f32 to vector<8x128xf32>
      %83 = arith.select %81, %67, %82 : vector<8x128xi1>, vector<8x128xf32>
      %cst_28 = arith.constant dense<0.000000e+00> : vector<8xf32>
      %84 = vector.multi_reduction <add>, %83, %cst_28 [1] : vector<8x128xf32> to vector<8xf32>
      %85 = vector.shape_cast %84 : vector<8xf32> to vector<8x1xf32>
      %c0_29 = arith.constant 0 : index
      %c0_30 = arith.constant 0 : index
      %86 = vector.load %arg8[%c0_29, %c0_30] : memref<1x1xf32, #tpu.memory_space<vmem>>, vector<1x1xf32>
      %cst_31 = arith.constant dense<0.000000e+00> : vector<1xf32>
      %87 = vector.multi_reduction <add>, %85, %cst_31 [0] : vector<8x1xf32> to vector<1xf32>
      %88 = vector.shape_cast %87 : vector<1xf32> to vector<1x1xf32>
      %89 = arith.addf %86, %88 : vector<1x1xf32>
      %c0_32 = arith.constant 0 : index
      %c0_33 = arith.constant 0 : index
      %90 = vector.load %arg8[%c0_32, %c0_33] : memref<1x1xf32, #tpu.memory_space<vmem>>, vector<1x1xf32>
      tpu.vector_store %arg8[%c0_32, %c0_33], %89 {strides = array<i32>} : memref<1x1xf32, #tpu.memory_space<vmem>>, vector<1x1xf32>,
    } else {
    }
    %c1_i32_22 = arith.constant 1 : i32
    %56 = arith.cmpi eq, %arg1, %c1_i32_22 : i32
    %true = arith.constant true
    %57 = arith.xori %51, %true : i1
    %58 = arith.andi %56, %57 : i1
    %59 = arith.extui %58 : i1 to i32
    %c0_i32_23 = arith.constant 0 : i32
    %60 = arith.cmpi ne, %59, %c0_i32_23 : i32
    scf.if %60 {
      %c0_24 = arith.constant 0 : index
      %c0_25 = arith.constant 0 : index
      %61 = vector.load %arg10[%c0_24, %c0_25] : memref<8x1xf32, #tpu.memory_space<vmem>>, vector<8x1xf32>
      %cst_26 = arith.constant 9.99999997E-7 : f32
      %62 = vector.broadcast %cst_26 : f32 to vector<8x1xf32>
      %63 = arith.addf %61, %62 : vector<8x1xf32>
      %64 = vector.broadcast %63 : vector<8x1xf32> to vector<8x128xf32>
      %65 = arith.addf %22, %64 : vector<8x128xf32>
      %66 = math.log %65 : vector<8x128xf32>
      %67 = arith.subf %66, %21 : vector<8x128xf32>
      %68 = vector.broadcast %32 : vector<1x128xi1> to vector<8x128xi1>
      %69 = arith.andi %27, %68 : vector<8x128xi1>
      %70 = vector.broadcast %37 : vector<8x1xi1> to vector<8x128xi1>
      %71 = arith.andi %69, %70 : vector<8x128xi1>
      %cst_27 = arith.constant 0.000000e+00 : f32
      %72 = vector.broadcast %cst_27 : f32 to vector<8x128xf32>
      %73 = arith.select %71, %67, %72 : vector<8x128xi1>, vector<8x128xf32>
      %cst_28 = arith.constant dense<0.000000e+00> : vector<8xf32>
      %74 = vector.multi_reduction <add>, %73, %cst_28 [1] : vector<8x128xf32> to vector<8xf32>
      %75 = vector.shape_cast %74 : vector<8xf32> to vector<8x1xf32>
      %c0_29 = arith.constant 0 : index
      %c0_30 = arith.constant 0 : index
      %76 = vector.load %arg8[%c0_29, %c0_30] : memref<1x1xf32, #tpu.memory_space<vmem>>, vector<1x1xf32>
      %cst_31 = arith.constant dense<0.000000e+00> : vector<1xf32>
      %77 = vector.multi_reduction <add>, %75, %cst_31 [0] : vector<8x1xf32> to vector<1xf32>
      %78 = vector.shape_cast %77 : vector<1xf32> to vector<1x1xf32>
      %79 = arith.addf %76, %78 : vector<1x1xf32>
      %c0_32 = arith.constant 0 : index
      %c0_33 = arith.constant 0 : index
      %80 = vector.load %arg8[%c0_32, %c0_33] : memref<1x1xf32, #tpu.memory_space<vmem>>, vector<1x1xf32>
      tpu.vector_store %arg8[%c0_32, %c0_33], %79 {strides = array<i32>} : memref<1x1xf32, #tpu.memory_space<vmem>>, vector<1x1xf32>,
    } else {
    }
    return
  }
  func.func @transform_0(%arg0: i32, %arg1: i32, %arg2: i32, %arg3: memref<3xi32, #tpu.memory_space<smem>>) -> (i32, i32) {
    %c0_i32 = arith.constant 0 : i32
    %c0_i32_0 = arith.constant 0 : i32
    return %arg0, %c0_i32 : i32, i32
  }
  func.func @transform_1(%arg0: i32, %arg1: i32, %arg2: i32, %arg3: memref<3xi32, #tpu.memory_space<smem>>) -> (i32, i32) {
    %c0_i32 = arith.constant 0 : i32
    %c0_i32_0 = arith.constant 0 : i32
    return %arg2, %c0_i32 : i32, i32
  }
  func.func @transform_2(%arg0: i32, %arg1: i32, %arg2: i32, %arg3: memref<3xi32, #tpu.memory_space<smem>>) -> (i32, i32) {
    %c0_i32 = arith.constant 0 : i32
    %c0_i32_0 = arith.constant 0 : i32
    return %arg0, %c0_i32 : i32, i32
  }
  func.func @transform_3(%arg0: i32, %arg1: i32, %arg2: i32, %arg3: memref<3xi32, #tpu.memory_space<smem>>) -> (i32, i32) {
    %c0_i32 = arith.constant 0 : i32
    %c0_i32_0 = arith.constant 0 : i32
    return %c0_i32, %arg2 : i32, i32
  }
  func.func @transform_4(%arg0: i32, %arg1: i32, %arg2: i32, %arg3: memref<3xi32, #tpu.memory_space<smem>>) -> (i32, i32) {
    %c0_i32 = arith.constant 0 : i32
    %c0_i32_0 = arith.constant 0 : i32
    %c0_i32_1 = arith.constant 0 : i32
    return %c0_i32, %c0_i32_0 : i32, i32
  }
  func.func @transform_5(%arg0: i32, %arg1: i32, %arg2: i32, %arg3: memref<3xi32, #tpu.memory_space<smem>>) -> (i32, i32) {
    %c0_i32 = arith.constant 0 : i32
    %c0_i32_0 = arith.constant 0 : i32
    %c0_i32_1 = arith.constant 0 : i32
    return %c0_i32, %c0_i32_0 : i32, i32
  }
}

</mosaic_0001>

<bundles_post_ra>
// kernel: tpu_custom_call.1
= control target key start
LH: loop header
LB: loop body
LE: loop exit
PB: predicated region body
PF: predicated region fallthrough
CT: control target
= control target key end

     0   :  { %s1173_s0 = inlined_call_operand.vmem [shape: s32[3], index: 0, kind: input, shape index: {}]   ;;  %s1174_s1 = inlined_call_operand.vmem [shape: f32[8,128], index: 1, kind: input, shape index: {}]   ;;  %s1175_s2 = inlined_call_operand.hbm [shape: f32[128,128], index: 2, kind: input, shape index: {}]   ;;  %s1176_s3 = inlined_call_operand.vmem [shape: s32[8,1], index: 3, kind: input, shape index: {}]   ;;  %s1177_s4 = inlined_call_operand.vmem [shape: s32[1,128], index: 4, kind: input, shape index: {}]   ;;  %s1178_s5 = inlined_call_operand.hbm [shape: f32[1,1], index: 5, kind: output, shape index: {0}]   ;;  %s1179_s6 = inlined_call_operand.hbm [shape: f32[1,1], index: 6, kind: output, shape index: {1}]  }
   0x1   :  { %s12_s23 = sshll.u32 %s1173_s0, 4  ;;  %s13_s23 = int_to_ptr.vmem [resolvable:$true] %s12_s23 }
   0x2   :  { %s821_s24 = scalar_lea.vmem %s13_s23, 16  ;;  %p826_p1 = scmp.lt.s32.totalorder %s13_s23, %s13_s23 }
   0x3   :  { %p822_p0 = scmp.ne.s32.totalorder %s13_s23, %s821_s24  ;;  %p827_p2 = scmp.lt.s32.totalorder %s821_s24, %s821_s24 }
   0x5   :  { %p828_p3 = por %p827_p2, %p826_p1 }
   0x7   :  { %p829_p4 = pnand %p828_p3, %p822_p0 }
   0x9   :  { %832 = shalt.err (!%p829_p4)  }
   0xa   :  { %s945_s25 = smov [#allocation5]  }
   0xb   :  { %15 = dma.vmem_to_smem %s13_s23, 16, %s945_s25, [#allocation4] }
   0xc   :  { %919 = dma.done.wait [#allocation4], 16 }
   0xd   :  { %920 = vsyncadd [#allocation4], 4294967280 }
   0xe   :  { %17 = sfence }
   0xf   :  { %18 = vsyncpa [#allocation7], 0 }
  0x10   :  { %19 = vsyncpa [#allocation8], 0 }
  0x11   :  { %20 = vsyncpa [#allocation11], 0  ;;  %s998_s26 = smov 0   ;;  %s1000_s27 = smov 0  }
  0x12   :  { %s1002_s0 = smov 0  }
  0x13 LB: > { %s671_s28 = sadd.s32 4294967295, %s943_s0   ;;  %s41_s29 = sadd.s32 1, %s939_s27  ;;  %s943_s0 = sphi %s1002_s0, %s26_s0   ;;  %s939_s27 = sphi %s1000_s27, %s1189_s27   ;;  %s935_s26 = sphi %s998_s26, %s1188_s26  }
  0x14   : > { %p43_p5 = scmp.ge.s32.totalorder %s41_s29, 2  ;;  %p672_p6 = scmp.ge.s32.totalorder %s943_s0, 1 }
  0x15   : > { %p196_p7 = scmp.lt.s32.totalorder %s943_s0, 3  ;;  %p1025_p9 = scmp.eq.s32.totalorder %s671_s28, 0 }
  0x16   : > { %s1191_s29 = smov (%p43_p5, %s41_s29), 0  ;;  %s946_s8 = smov [#allocation6]  }
  0x17   : > { %p1019_p8 = pnand %p672_p6, %p196_p7  ;;  %s218_s9 = sshll.u32 %s946_s8, 4  ;;  %s219_s9 = int_to_ptr.vmem [resolvable:$true] %s218_s9 }
  0x18   : > { %s844_s10 = scalar_lea.vmem %s219_s9, 2048  ;;  %p852_p2 = scmp.lt.s32.totalorder %s219_s9, %s219_s9 }
  0x19   : > { %p761_p10 = pneg %p1019_p8  ;;  %p845_p13 = scmp.ne.s32.totalorder %s219_s9, %s844_s10 }
  0x1a   : > { %p853_p3 = scmp.lt.s32.totalorder %s844_s10, %s844_s10 }
  0x1b   : > { %p762_p11 = pnand %p1025_p9, %p761_p10 }
  0x1c   : > { %p854_p4 = por %p853_p3, %p852_p2 }
  0x1d   : > { %p835_p12 = pneg %p762_p11 }
  0x1f   : > { %p847_p0 = pnand %p845_p13, %p835_p12 }
  0x21   : > { %p848_p1 = pneg %p847_p0 }
  0x23   : > { %p855_p5 = pnand %p854_p4, %p848_p1 }
  0x25   : > { %858 = shalt.err (!%p855_p5)
}
  0x26   : > { %s947_s11 = smov 128   ;;  %s948_s12 = smov 8  }
  0x27   : > { %764 = dma.hbm_to_vmem [thread:$0]  (!%p762_p11), %s1175_s2, 2048, %s219_s9, [#allocation7], %s947_s11, %s947_s11, %s948_s12  }
  0x28   : > { %247 = sbr.rel (%p1019_p8) target bundleno = 1184 (0x4a0), region = 36 }
  0x2d   : > { %922 = dma.done.wait (%p1025_p9), [#allocation7], 2048  }
  0x2e   : > { %924 = vsyncadd (%p1025_p9), [#allocation7], 4294965248  ;;  %p294_p6 = scmp.eq.s32.totalorder %s935_s26, 0  ;;  %s1043_s15 = sld [smem:[#allocation5]] }
  0x2f   : > { %s1045_s16 = sld [smem:[#allocation5 + $0x1]]  ;;  %vm302_vm0 = vcmask (%p294_p6), 0   ;;  %v949_v0 = vmov (%p294_p6), 0.0  }
  0x30   : > { %s1047_s17 = sld [smem:[#allocation5 + $0x2]]  ;;  %301 = sbr.rel (!%p294_p6) target bundleno = 53 (0x35), region = 44  ;;  %303 = vst.msk [vmem:[#allocation9] sm:$0x1] (%p294_p6), %vm302_vm0, %v949_v0  ;;  %304 = vst.msk [vmem:[#allocation10] sm:$0x1] (%p294_p6), %vm302_vm0, %v949_v0 }
  0x35 PF: > { %308 = sbr.rel (!%p294_p6) target bundleno = 58 (0x3a), region = 48  ;;  %vm309_vm1 = vcmask (%p294_p6), 7168   ;;  %v950_v1 = vmov (%p294_p6), 0.0   ;;  %v951_v2 = vmov (%p294_p6), -100.0  }
  0x36   : > { %310 = vst.msk [vmem:[#allocation2] sm:$0xff] (%p294_p6), %vm309_vm1, %v950_v1  ;;  %311 = vst.msk [vmem:[#allocation3] sm:$0xff] (%p294_p6), %vm309_vm1, %v951_v2 }
  0x3a PF: > { %v328_v3 = vld [vmem:[#allocation6 + $0x78] sm:$0xff]  ;;  %v952_v4 = vmov 0.0   ;;  %vm953_vm2 = vmmov 0   ;;  %v954_v5 = vmov 0   ;;  %v327_v6 = vld [vmem:[#allocation6 + $0x70] sm:$0xff]  ;;  %v326_v8 = vld [vmem:[#allocation6 + $0x68] sm:$0xff]  ;;  %v412_v23 = vlaneseq }
  0x3b   : > { %714 = vmatprep.subr.mxu0 %v952_v4  ;;  %746 = vmatprep.mubr.msk.f32.mxu0 %vm953_vm2, %v952_v4  ;;  %v402_v7 = vld [vmem:[%s1176_s3] sm:$0xff]  ;;  %v325_v9 = vld [vmem:[#allocation6 + $0x60] sm:$0xff]  ;;  %v324_v10 = vld [vmem:[#allocation6 + $0x58] sm:$0xff]  ;;  %v416_v28 = vstv %s1047_s17  ;;  %v422_v29 = vstv %s1045_s16  ;;  %p685_p7 = scmp.ne.s32.totalorder %s935_s26, 0 }
  0x3c   : > { %715 = vmatpush3.xpose.msra.mxu0 %v328_v3  ;;  %810 = vset.pattern.permute.xlu0 %v954_v5  ;;  %v323_v11 = vld [vmem:[#allocation6 + $0x50] sm:$0xff]  ;;  %v322_v12 = vld [vmem:[#allocation6 + $0x48] sm:$0xff]  ;;  %v321_v13 = vld [vmem:[#allocation6 + $0x40] sm:$0xff]  ;;  %v1059_v24 = vand.u32 127, %v412_v23  ;;  %v1061_v25 = vshrl.u32 %v412_v23, 7 }
  0x3d   : > { %716 = vmatprep.subr.mxu0 %v952_v4  ;;  %405 = vperm.xlu0 %810, %v402_v7   ;;  %v320_v14 = vld [vmem:[#allocation6 + $0x38] sm:$0xff]  ;;  %v319_v15 = vld [vmem:[#allocation6 + $0x30] sm:$0xff]  ;;  %v318_v16 = vld [vmem:[#allocation6 + $0x28] sm:$0xff] }
  0x3e   : > { %v317_v17 = vld [vmem:[#allocation6 + $0x20] sm:$0xff]  ;;  %v316_v18 = vld [vmem:[#allocation6 + $0x18] sm:$0xff]  ;;  %v315_v19 = vld [vmem:[#allocation6 + $0x10] sm:$0xff]  ;;  %vm1075_vm4 = vcmp.lt.s32.totalorder %v1059_v24, %v416_v28  ;;  %vm1080_vm5 = vcmp.lt.s32.totalorder %v1061_v25, %v422_v29 }
  0x3f   : > { %v314_v20 = vld [vmem:[#allocation6 + $0x8] sm:$0xff]  ;;  %v313_v21 = vld [vmem:[#allocation6] sm:$0xff]  ;;  %v312_v22 = vld [vmem:[%s1174_s1] sm:$0xff] }
  0x40   : > { %717 = vmatpush3.xpose.msra.mxu0 %v327_v6  ;;  %v1066_v26 = vld [vmem:[%s1177_s4] ss:$0 sm:$0xff] }
  0x41   : > { %718 = vmatprep.subr.mxu0 %v952_v4 }
  0x44   : > { %719 = vmatpush3.xpose.msra.mxu0 %v326_v8 }
  0x45   : > { %720 = vmatprep.subr.mxu0 %v952_v4 }
  0x48   : > { %721 = vmatpush3.xpose.msra.mxu0 %v325_v9 }
  0x49   : > { %722 = vmatprep.subr.mxu0 %v952_v4 }
  0x4c   : > { %723 = vmatpush3.xpose.msra.mxu0 %v324_v10 }
  0x4d   : > { %724 = vmatprep.subr.mxu0 %v952_v4 }
  0x50   : > { %725 = vmatpush3.xpose.msra.mxu0 %v323_v11 }
  0x51   : > { %726 = vmatprep.subr.mxu0 %v952_v4 }
  0x54   : > { %727 = vmatpush3.xpose.msra.mxu0 %v322_v12 }
  0x55   : > { %728 = vmatprep.subr.mxu0 %v952_v4 }
  0x58   : > { %729 = vmatpush3.xpose.msra.mxu0 %v321_v13 }
  0x59   : > { %730 = vmatprep.subr.mxu0 %v952_v4 }
  0x5c   : > { %731 = vmatpush3.xpose.msra.mxu0 %v320_v14 }
  0x5d   : > { %732 = vmatprep.subr.mxu0 %v952_v4 }
  0x60   : > { %733 = vmatpush3.xpose.msra.mxu0 %v319_v15 }
  0x61   : > { %734 = vmatprep.subr.mxu0 %v952_v4 }
  0x64   : > { %735 = vmatpush3.xpose.msra.mxu0 %v318_v16 }
  0x65   : > { %736 = vmatprep.subr.mxu0 %v952_v4 }
  0x68   : > { %737 = vmatpush3.xpose.msra.mxu0 %v317_v17 }
  0x69   : > { %738 = vmatprep.subr.mxu0 %v952_v4 }
  0x6c   : > { %739 = vmatpush3.xpose.msra.mxu0 %v316_v18 }
  0x6d   : > { %740 = vmatprep.subr.mxu0 %v952_v4 }
  0x70   : > { %741 = vmatpush3.xpose.msra.mxu0 %v315_v19 }
  0x71   : > { %742 = vmatprep.subr.mxu0 %v952_v4 }
  0x74   : > { %743 = vmatpush3.xpose.msra.mxu0 %v314_v20 }
  0x75   : > { %744 = vmatprep.subr.mxu0 %v952_v4 }
  0x78   : > { %745 = vmatpush3.xpose.msra.mxu0 %v313_v21 }
  0x7b   : > { %747 = vmatmul.mubr.f32.vlgmr.msra.gmra.mxu0 %v312_v22 }
  0xb8   : > { %v1068_v27 = vpop.permute.xlu0 %405 }
  0xb9   : > { %vm411_vm3 = vcmp.eq.s32.totalorder %v1068_v27, %v1066_v26 }
 0x13b   : > { %v395_v32 = vpop.f32.mrf.mxu0 }
 0x13c   : > { %v1084_v33 = vmul.f32 2.0, %v395_v32 }
 0x13d   : > { %v748_v34 = vpop.f32.mrf.mxu0 }
 0x13e   : > { %v400_v35 = vmul.f32 1.442695, %v1084_v33 }
 0x140   : > { %811 = vpow2.f32 %v400_v35 }
 0x149   : > { %426 = sbr.rel (%p685_p7) target bundleno = 483 (0x1e3), region = 52 }
 0x14d   : > { %v1087_v36 = vpop.eup %811 }
 0x14e   : > { %vm955_vm6 = vmmov 1   ;;  %v431_v39 = vld [vmem:[#allocation2] sm:$0xff]  ;;  %vm436_vm9 = vcmask 7168   ;;  %v439_v42 = vld [vmem:[#allocation3] sm:$0xff] }
 0x14f   : > { %vm427_vm7 = vmxor %vm411_vm3, %vm955_vm6 }
 0x150   : > { %vm430_vm8 = vmand %vm427_vm7, %vm1075_vm4 }
 0x151   : > { %v432_v37 = vsel %vm430_vm8, %v1087_v36, 0.0  ;;  %v438_v38 = vsel %vm430_vm8, %v395_v32, -100.0 }
 0x152   : > { %433 = vadd.xlane.f32.xlu0 %v432_v37 }
 0x156   : > { %440 = vmax.xlane.f32.xlu0 %v438_v38 }
 0x1db   : > { %v434_v40 = vpop.xlane.xlu0 %433 }
 0x1dc   : > { %v435_v41 = vadd.f32 %v434_v40, %v431_v39 }
 0x1de   : > { %437 = vst.msk [vmem:[#allocation2] sm:$0xff] %vm436_vm9, %v435_v41 }
 0x1df   : > { %v441_v43 = vpop.xlane.xlu0 %440 }
 0x1e0   : > { %v442_v44 = vmax.f32 %v439_v42, %v441_v43 }
 0x1e2   : > { %443 = vst.msk [vmem:[#allocation3] sm:$0xff] %vm436_vm9, %v442_v44 }
 0x1e3 PF: > { %445 = sbr.rel (!%p294_p6) target bundleno = 531 (0x213), region = 56  ;;  %vm455_vm10 = vcmask (%p294_p6), 7168   ;;  %v454_v59 = vld [vmem:[#allocation10] sm:$0x1] (%p294_p6)  ;;  %vm464_vm11 = vcmask (%p294_p6), 0  }
 0x1e9   : > { %v446_v45 = vld [vmem:[#allocation3] sm:$0xff] }
 0x1ea   : > { %v447_v46 = vmul.f32 2.0, %v446_v45 }
 0x1ec   : > { %v448_v47 = vsub.f32 2.0, %v447_v46 }
 0x1ee   : > { %v449_v48 = vmax.f32 %v448_v47, 1e-06 }
 0x1f0   : > { %813 = vlog2.f32 %v449_v48 }
 0x1fd   : > { %v814_v49 = vpop.eup %813 }
 0x1fe   : > { %v451_v50 = vmul.f32 0.6931472, %v814_v49 }
 0x200   : > { %v452_v51 = vmul.f32 0.5, %v451_v50 }
 0x202   : > { %v453_v52 = vsel %vm1080_vm5, %v452_v51, 0.0 }
 0x203   : > { %v456_v53 = vsel %vm455_vm10, %v453_v52, 0.0 }
 0x204   : > { %v457_v54 = vrot.slane %v456_v53, 4 }
 0x206   : > { %v458_v55 = vadd.f32 %v457_v54, %v456_v53 }
 0x208   : > { %v459_v56 = vrot.slane %v458_v55, 2 }
 0x20a   : > { %v460_v57 = vadd.f32 %v459_v56, %v458_v55 }
 0x20c   : > { %v461_v58 = vrot.slane %v460_v57, 1 }
 0x20e   : > { %v462_v60 = vadd.f32 %v461_v58, %v460_v57 }
 0x210   : > { %v463_v61 = vadd.f32 %v462_v60, %v454_v59 }
 0x212   : > { %465 = vst.msk [vmem:[#allocation10] sm:$0x1] %vm464_vm11, %v463_v61 }
 0x213 PF: > { %s466_s24 = smul.u32 %s1045_s16, %s1043_s15  ;;  %p473_p11 = scmp.eq.s32.totalorder %s935_s26, 1 }
 0x215   : > { %s467_s25 = sadd.s32 %s1045_s16, %s466_s24  ;;  %p687_p8 = scmp.lt.s32.totalorder %s466_s24, 128 }
 0x216   : > { %p686_p9 = scmp.gt.s32.totalorder %s467_s25, 0 }
 0x218   : > { %p1103_p10 = pnand %p687_p8, %p686_p9 }
 0x21a   : > { %p472_p12 = pneg %p1103_p10 }
 0x21c   : > { %p474_p13 = pnand %p473_p11, %p472_p12 }
 0x21e   : > { %477 = sbr.rel (%p474_p13) target bundleno = 848 (0x350), region = 60 }
 0x223   : > { %v478_v62 = vld [vmem:[#allocation2] sm:$0xff]  ;;  %v956_v63 = vmov 0   ;;  %v495_v3 = vstv %s466_s24  ;;  %vm491_vm12 = vmand %vm411_vm3, %vm1075_vm4  ;;  %v502_v15 = vld [vmem:[#allocation9] sm:$0x1]  ;;  %vm510_vm0 = vcmask 0  }
 0x224   : > { %815 = vset.pattern.permute.xlu0 %v956_v63  ;;  %v479_v0 = vadd.f32 1e-06, %v478_v62  ;;  %v496_v4 = vadd.s32 %v495_v3, %v1061_v25  ;;  %vm494_vm13 = vmand %vm491_vm12, %vm1080_vm5 }
 0x226   : > { %482 = vperm.xlu0 %815, %v479_v0   ;;  %vm497_vm14 = vcmp.ne.s32.totalorder %v1059_v24, %v496_v4 }
 0x227   : > { %vm498_vm15 = vmand %vm494_vm13, %vm497_vm14 }
 0x2a1   : > { %v483_v1 = vpop.permute.xlu0 %482 }
 0x2a2   : > { %v485_v2 = vadd.f32 %v1087_v36, %v483_v1 }
 0x2a4   : > { %816 = vlog2.f32 %v485_v2 }
 0x2b1   : > { %v817_v5 = vpop.eup %816 }
 0x2b2   : > { %v487_v6 = vmul.f32 0.6931472, %v817_v5 }
 0x2b4   : > { %v488_v7 = vsub.f32 %v487_v6, %v1084_v33 }
 0x2b6   : > { %v499_v8 = vsel %vm498_vm15, %v488_v7, 0.0 }
 0x2b7   : > { %500 = vadd.xlane.f32.xlu0 %v499_v8 }
 0x340   : > { %v501_v9 = vpop.xlane.xlu0 %500 }
 0x341   : > { %v503_v10 = vrot.slane %v501_v9, 4 }
 0x343   : > { %v504_v11 = vadd.f32 %v503_v10, %v501_v9 }
 0x345   : > { %v505_v12 = vrot.slane %v504_v11, 2 }
 0x347   : > { %v506_v13 = vadd.f32 %v505_v12, %v504_v11 }
 0x349   : > { %v507_v14 = vrot.slane %v506_v13, 1 }
 0x34b   : > { %v508_v16 = vadd.f32 %v507_v14, %v506_v13 }
 0x34d   : > { %v509_v17 = vadd.f32 %v508_v16, %v502_v15 }
 0x34f   : > { %511 = vst.msk [vmem:[#allocation9] sm:$0x1] %vm510_vm0, %v509_v17 }
 0x350 PF: > { %p513_p0 = pnand %p473_p11, %p1103_p10 }
 0x352   : > { %516 = sbr.rel (%p513_p0) target bundleno = 1156 (0x484), region = 64 }
 0x357   : > { %v517_v18 = vld [vmem:[#allocation2] sm:$0xff]  ;;  %v957_v19 = vmov 0   ;;  %vm530_vm1 = vmand %vm411_vm3, %vm1075_vm4  ;;  %v537_v30 = vld [vmem:[#allocation9] sm:$0x1]  ;;  %vm545_vm6 = vcmask 0  }
 0x358   : > { %818 = vset.pattern.permute.xlu0 %v957_v19  ;;  %v518_v20 = vadd.f32 1e-06, %v517_v18  ;;  %vm533_vm2 = vmand %vm530_vm1, %vm1080_vm5 }
 0x35a   : > { %521 = vperm.xlu0 %818, %v518_v20  }
 0x3d5   : > { %v522_v21 = vpop.permute.xlu0 %521 }
 0x3d6   : > { %v524_v22 = vadd.f32 %v1087_v36, %v522_v21 }
 0x3d8   : > { %819 = vlog2.f32 %v524_v22 }
 0x3e5   : > { %v820_v23 = vpop.eup %819 }
 0x3e6   : > { %v526_v24 = vmul.f32 0.6931472, %v820_v23 }
 0x3e8   : > { %v527_v25 = vsub.f32 %v526_v24, %v1084_v33 }
 0x3ea   : > { %v534_v28 = vsel %vm533_vm2, %v527_v25, 0.0 }
 0x3eb   : > { %535 = vadd.xlane.f32.xlu0 %v534_v28 }
 0x474   : > { %v536_v29 = vpop.xlane.xlu0 %535 }
 0x475   : > { %v538_v32 = vrot.slane %v536_v29, 4 }
 0x477   : > { %v539_v34 = vadd.f32 %v538_v32, %v536_v29 }
 0x479   : > { %v540_v35 = vrot.slane %v539_v34, 2 }
 0x47b   : > { %v541_v36 = vadd.f32 %v540_v35, %v539_v34 }
 0x47d   : > { %v542_v37 = vrot.slane %v541_v36, 1 }
 0x47f   : > { %v543_v38 = vadd.f32 %v542_v37, %v541_v36 }
 0x481   : > { %v544_v26 = vadd.f32 %v543_v38, %v537_v30 }
 0x483   : > { %546 = vst.msk [vmem:[#allocation9] sm:$0x1] %vm545_vm6, %v544_v26 }
 0x484 PF: > { %p1138_p1 = scmp.eq.s32.totalorder %s671_s28, 1  ;;  %s958_s7 = smov [#allocation9]  }
 0x485   : > { %s554_s8 = sshll.u32 %s958_s7, 4  ;;  %s959_s9 = smov [#allocation10]   ;;  %s555_s8 = int_to_ptr.vmem [resolvable:$true] %s554_s8 }
 0x486   : > { %s565_s10 = sshll.u32 %s959_s9, 4  ;;  %s859_s11 = scalar_lea.vmem %s555_s8, 16  ;;  %s566_s10 = int_to_ptr.vmem [resolvable:$true] %s565_s10 }
 0x487   : > { %p860_p2 = scmp.ne.s32.totalorder %s555_s8, %s859_s11  ;;  %s865_s12 = scalar_lea.vmem %s555_s8, 32 }
 0x488   : > { %p866_p5 = scmp.lt.s32.totalorder %s555_s8, %s555_s8  ;;  %p867_p6 = scmp.lt.s32.totalorder %s865_s12, %s859_s11 }
 0x489   : > { %p861_p3 = pnand %p860_p2, %p1138_p1 }
 0x48a   : > { %p868_p7 = por %p867_p6, %p866_p5 }
 0x48b   : > { %p862_p4 = pneg %p861_p3 }
 0x48d   : > { %p869_p8 = pnand %p868_p7, %p862_p4 }
 0x48f   : > { %872 = shalt.err (!%p869_p8)
}
 0x490   : > { %754 = dma.vmem_to_hbm [thread:$0]  (%p1138_p1), %s555_s8, 16, %s1178_s5, [#allocation8]  }
 0x491   : > { %s883_s14 = scalar_lea.vmem %s566_s10, 16  ;;  %s889_s15 = scalar_lea.vmem %s566_s10, 32 }
 0x492   : > { %p884_p9 = scmp.ne.s32.totalorder %s566_s10, %s883_s14  ;;  %p890_p12 = scmp.lt.s32.totalorder %s566_s10, %s566_s10 }
 0x493   : > { %p891_p13 = scmp.lt.s32.totalorder %s889_s15, %s883_s14 }
 0x494   : > { %p885_p10 = pnand %p884_p9, %p1138_p1 }
 0x495   : > { %p892_p0 = por %p891_p13, %p890_p12 }
 0x496   : > { %p886_p11 = pneg %p885_p10 }
 0x498   : > { %p893_p2 = pnand %p892_p0, %p886_p11 }
 0x49a   : > { %896 = shalt.err (!%p893_p2)
}
 0x49b   : > { %756 = dma.vmem_to_hbm [thread:$0]  (%p1138_p1), %s566_s10, 16, %s1179_s6, [#allocation11]  }
 0x49c   : > { %926 = dma.done.wait (%p1138_p1), [#allocation8], 16  }
 0x49d   : > { %928 = vsyncadd (%p1138_p1), [#allocation8], 4294967280 }
 0x49e   : > { %930 = dma.done.wait (%p1138_p1), [#allocation11], 16  }
 0x49f   : > { %932 = vsyncadd (%p1138_p1), [#allocation11], 4294967280 }
 0x4a0 PF: > { %s26_s0 = sadd.s32 1, %s943_s0   ;;  %s1188_s26 = smov %s939_s27 }
 0x4a1   : > { %p23_p3 = scmp.ge.s32.totalorder %s26_s0, 4   ;;  %s1189_s27 = smov %s1191_s29 }
 0x4a3   :  { %25 = sbr.rel (!%p23_p3) target bundleno = 19 (0x13), region = 107 }
 0x4a8   :  { %582 = vsyncpa [#allocation7], 1 }
 0x4a9   :  { %584 = vsyncpa [#allocation7 + $0x1], 1 }
 0x4aa   :  { %585 = vsyncpa [#allocation8], 1 }
 0x4ab   :  { %587 = vsyncpa [#allocation8 + $0x1], 1 }
 0x4ac   :  { %588 = vsyncpa [#allocation11], 1 }

</bundles_post_ra>
